<compile_context>
chip_gen: v7x
topology: tpu7x:2x2x1
jax: 0.10.0
libtpu: 0.0.40
codegen_flags: <defaults>
</compile_context>

<pallas_src>
import math

import jax
import jax.numpy as jnp
from jax.experimental import pallas as pl
from jax.experimental.pallas import tpu as pltpu


# ----------------------------------------------------------------------------
# Generation-aware VMEM budget (v5e/v6e: 128 MiB, v7x: 64 MiB), ~25% headroom.
# ----------------------------------------------------------------------------
def _vmem_limit_bytes():
    cap = None
    try:
        cap = getattr(pltpu.get_tpu_info(), "vmem_capacity_bytes", None)
    except Exception:
        cap = None
    if not cap or cap <= 0:
        cap = 64 * 1024 * 1024          # conservative v7x-class default
    return int(cap) * 3 // 4


def _const_spec(shape):
    """BlockSpec for a grid-invariant (constant) operand of arbitrary rank."""
    nd = len(shape)

    def imap(*_):
        return (0,) * nd

    return pl.BlockSpec(shape, imap)


# ----------------------------------------------------------------------------
# Tile pickers: largest candidate that divides the extent AND fits the budget.
# ----------------------------------------------------------------------------
def _knn_tile(n, vmem_limit):
    per_row = 24 * n + 64                       # dist block + iota + live copies
    cap = max(vmem_limit // per_row, 8)
    for t in (512, 256, 128, 64, 32, 16, 8):
        if t <= cap and n % t == 0:
            return t
    return n                                     # small / ragged N fallback


def _proj_tile(rows, dp, dm, vmem_limit):
    weight_bytes = dp * 3 * dm * 2 * 2 + 3 * dm * 4 * 2
    per_row = (dp * 2 + 3 * dm * 2) * 2          # bf16 in + 3 bf16 outs, 2 bufs
    budget = max(vmem_limit - weight_bytes, vmem_limit // 2)
    cap = max(budget // max(per_row, 1), 128)
    for t in (2048, 1024, 512, 256, 128):
        if t <= cap and rows % t == 0:
            return t
    return rows


def _attn_tile(n, k, d, dp, vmem_limit):
    weight_bytes = (3 * d * d + dp * d) * 2 * 2 + (6 * d + dp) * 4 * 2
    # ~6 f32 [K,D] temporaries per point + double-buffered bf16 kg/vg blocks.
    per_point = 6 * k * d * 4 + 2 * (2 * k * d * 2) + k * 3 * 4 * 2 \
        + d * 2 * 2 + 2 * dp * 4 * 2
    budget = max(vmem_limit - weight_bytes, vmem_limit // 3)
    cap = max(budget // max(per_point, 1), 8)
    for t in (256, 128, 64, 32, 16, 8):
        if t <= cap and n % t == 0:
            return t
    return n


# ----------------------------------------------------------------------------
# Kernel A: fused pairwise squared distance + kNN index selection.
#   dist[i, j] = |x_i|^2 + |x_j|^2 - 2 * x_i . x_j   (VPU broadcast FMAs)
#   then k rounds of masked min-reduction -> [TI, k] int32 neighbor indices.
# ----------------------------------------------------------------------------
def _make_knn_kernel(k):
    def kernel(src_ref, dstT_ref, idx_ref):
        src = src_ref[0]                                   # [TI, 3] f32
        dstT = dstT_ref[0]                                 # [3, N]  f32
        x0, x1, x2 = src[:, 0:1], src[:, 1:2], src[:, 2:3]
        y0, y1, y2 = dstT[0:1, :], dstT[1:2, :], dstT[2:3, :]
        cross = x0 * y0 + x1 * y1 + x2 * y2                # [TI, N] VPU
        s2 = x0 * x0 + x1 * x1 + x2 * x2                   # [TI, 1]
        d2 = y0 * y0 + y1 * y1 + y2 * y2                   # [1, N]
        d = s2 + d2 - 2.0 * cross                          # [TI, N]

        TI, N = d.shape
        lane = jax.lax.broadcasted_iota(jnp.int32, (TI, N), 1).astype(jnp.float32)
        col = jax.lax.broadcasted_iota(jnp.int32, (TI, k), 1)
        big = jnp.float32(1e30)
        acc = jnp.zeros((TI, k), jnp.float32)
        for j in range(k):
            mn = jnp.min(d, axis=-1, keepdims=True)        # [TI, 1]
            is_min = d <= mn
            sel = jnp.min(jnp.where(is_min, lane, jnp.float32(N)),
                          axis=-1, keepdims=True)          # first index of min
            acc = jnp.where(col == j, sel, acc)
            d = jnp.where(lane == sel, big, d)              # mask chosen column
        idx_ref[0] = acc.astype(jnp.int32)

    return kernel


def knn_pallas(xyz, k, vmem_limit):
    B, N, C = xyz.shape
    TI = _knn_tile(N, vmem_limit)
    xyz_f = xyz.astype(jnp.float32)
    xyz_t = jnp.transpose(xyz_f, (0, 2, 1))                # [B, 3, N] (tiny, XLA)

    return pl.pallas_call(
        _make_knn_kernel(k),
        out_shape=jax.ShapeDtypeStruct((B, N, k), jnp.int32),
        grid=(B, N // TI),
        in_specs=[
            pl.BlockSpec((1, TI, C), lambda b, i: (b, i, 0)),
            pl.BlockSpec((1, C, N), lambda b, i: (b, 0, 0)),
        ],
        out_specs=pl.BlockSpec((1, TI, k), lambda b, i: (b, i, 0)),
        compiler_params=pltpu.CompilerParams(
            dimension_semantics=("parallel", "parallel"),
            vmem_limit_bytes=vmem_limit),
    )(xyz_f, xyz_t)


# ----------------------------------------------------------------------------
# Kernel B: fused fc1 + [Wq|Wk|Wv] projection, three separate q/k/v outputs.
# ----------------------------------------------------------------------------
def _qkv_kernel(feat_ref, w_ref, b_ref, q_ref, k_ref, v_ref):
    acc = jnp.dot(feat_ref[...], w_ref[...],
                  preferred_element_type=jnp.float32) + b_ref[...]
    acc = acc.astype(q_ref.dtype)
    dm = q_ref.shape[-1]
    q_ref[...] = acc[:, :dm]
    k_ref[...] = acc[:, dm:2 * dm]
    v_ref[...] = acc[:, 2 * dm:3 * dm]


def projections_pallas(features, w_fused_bf16, b_fused, dm, vmem_limit):
    B, N, dp = features.shape
    rows = B * N
    rows_p = ((rows + 127) // 128) * 128                   # pad for clean tiling
    feat2 = features.reshape(rows, dp).astype(jnp.bfloat16)
    if rows_p != rows:
        feat2 = jnp.pad(feat2, ((0, rows_p - rows), (0, 0)))
    width = 3 * dm
    TM = _proj_tile(rows_p, dp, dm, vmem_limit)

    q, kx, vx = pl.pallas_call(
        _qkv_kernel,
        out_shape=[jax.ShapeDtypeStruct((rows_p, dm), jnp.bfloat16)] * 3,
        grid=(rows_p // TM,),
        in_specs=[
            pl.BlockSpec((TM, dp), lambda i: (i, 0)),
            pl.BlockSpec((dp, width), lambda i: (0, 0)),
            pl.BlockSpec((1, width), lambda i: (0, 0)),
        ],
        out_specs=[pl.BlockSpec((TM, dm), lambda i: (i, 0))] * 3,
        compiler_params=pltpu.CompilerParams(
            dimension_semantics=("parallel",),
            vmem_limit_bytes=vmem_limit),
    )(feat2, w_fused_bf16, b_fused)

    q = q[:rows].reshape(B, N, dm)
    kx = kx[:rows].reshape(B, N, dm)
    vx = vx[:rows].reshape(B, N, dm)
    return q, kx, vx


# ----------------------------------------------------------------------------
# Kernel C: fc_delta, fc_gamma, softmax over K, weighted sum, fc2 + residual.
# Output is written already transposed: [d_points, N-tile] (lane-dense stores).
# ----------------------------------------------------------------------------
def _attn_kernel(rel_ref, q_ref, kg_ref, vg_ref, pret_ref,
                 wd1_ref, bd1_ref, w3_ref, b3_ref, w2t_ref, b2_ref, out_ref):
    TN, K, D = kg_ref.shape[1], kg_ref.shape[2], kg_ref.shape[3]

    # fc_delta layer 1 ([.,3] @ [3,D]) as three VPU broadcast FMAs (f32):
    # a contraction width of 3 would waste MXU push slots.
    rel = rel_ref[0]                                        # [TN*K, 3] f32
    wd1 = wd1_ref[...]                                      # [3, D]    f32
    h = (rel[:, 0:1] * wd1[0:1, :]
         + rel[:, 1:2] * wd1[1:2, :]
         + rel[:, 2:3] * wd1[2:3, :]
         + bd1_ref[...])
    h = jnp.maximum(h, 0.0)

    b3 = b3_ref[...]                                        # [3, D] f32
    # fc_delta layer 2 on the MXU.
    pos = jnp.dot(h.astype(jnp.bfloat16), w3_ref[0],
                  preferred_element_type=jnp.float32) + b3[0:1, :]   # [TN*K, D]
    pos3 = pos.reshape(TN, K, D)

    q = q_ref[0]                                            # [TN, D]    bf16
    kg = kg_ref[0]                                          # [TN, K, D] bf16
    vg = vg_ref[0]                                          # [TN, K, D] bf16

    # fc_gamma(q - k + pos_enc): adds done in bf16 (feeds a bf16 MXU matmul
    # anyway), so no f32 copies of kg/vg are materialized.
    gin = (q[:, None, :] - kg + pos3.astype(jnp.bfloat16)).reshape(TN * K, D)
    g = jnp.dot(gin, w3_ref[1], preferred_element_type=jnp.float32) + b3[1:2, :]
    g = jnp.maximum(g, 0.0)
    # 1/sqrt(D) scale is pre-folded into w3[2] / b3[2] (exact).
    g = jnp.dot(g.astype(jnp.bfloat16), w3_ref[2],
                preferred_element_type=jnp.float32) + b3[2:3, :]
    logits = g.reshape(TN, K, D)

    # softmax over the neighbor axis (dim=-2 in PyTorch), f32 on the VPU/EUP.
    m = jnp.max(logits, axis=1, keepdims=True)
    e = jnp.exp(logits - m)
    denom = jnp.sum(e, axis=1, keepdims=True)
    attn = e * pl.reciprocal(denom, approx=True)

    # einsum('bmnf,bmnf->bmf') for this tile (vg upcast at point of use).
    res = jnp.sum(attn * (vg.astype(jnp.float32) + pos3), axis=1)     # [TN, D]

    # fc2 computed directly in transposed form:
    #   out_t[dp, TN] = (res @ W2)^T = W2^T @ res^T   (rhs-transposed matmul)
    out_t = jax.lax.dot_general(
        w2t_ref[...], res.astype(jnp.bfloat16),
        (((1,), (1,)), ((), ())),
        preferred_element_type=jnp.float32) + b2_ref[...]             # [dp, TN]
    out_ref[0] = out_t + pret_ref[0]                                  # + residual


def attention_pallas(rel, q, kg, vg, features, p, vmem_limit):
    B, N, K, D = kg.shape
    dp = features.shape[-1]
    TN = _attn_tile(N, K, D, dp, vmem_limit)

    rel_flat = rel.reshape(B, N * K, 3).astype(jnp.float32)
    features_t = jnp.transpose(features, (0, 2, 1))        # [B, dp, N]

    bf16 = jnp.bfloat16
    scale = 1.0 / math.sqrt(D)                             # folded into gamma W2/b2
    wd1 = p["delta_w1"].astype(jnp.float32)                # [3, D]  (VPU FMAs)
    bd1 = p["delta_b1"].astype(jnp.float32)                # [1, D]
    w3 = jnp.stack([p["delta_w2"], p["gamma_w1"],
                    p["gamma_w2"] * scale]).astype(bf16)   # [3, D, D]
    b3 = jnp.concatenate([p["delta_b2"], p["gamma_b1"],
                          p["gamma_b2"] * scale], axis=0).astype(jnp.float32)
    w2t = p["fc2_w"].T.astype(bf16)                        # [dp, D]
    b2c = p["fc2_b"].reshape(dp, 1).astype(jnp.float32)    # [dp, 1]

    # grid = (B, N//TN): B*(N/TN) >= 2 keeps both v7x TensorCores busy.
    return pl.pallas_call(
        _attn_kernel,
        out_shape=jax.ShapeDtypeStruct((B, dp, N), jnp.float32),
        grid=(B, N // TN),
        in_specs=[
            pl.BlockSpec((1, TN * K, 3), lambda b, n: (b, n, 0)),
            pl.BlockSpec((1, TN, D), lambda b, n: (b, n, 0)),
            pl.BlockSpec((1, TN, K, D), lambda b, n: (b, n, 0, 0)),
            pl.BlockSpec((1, TN, K, D), lambda b, n: (b, n, 0, 0)),
            pl.BlockSpec((1, dp, TN), lambda b, n: (b, 0, n)),
            _const_spec((3, D)), _const_spec((1, D)),
            _const_spec((3, D, D)), _const_spec((3, D)),
            _const_spec((dp, D)), _const_spec((dp, 1)),
        ],
        out_specs=pl.BlockSpec((1, dp, TN), lambda b, n: (b, 0, n)),
        compiler_params=pltpu.CompilerParams(
            dimension_semantics=("parallel", "parallel"),
            vmem_limit_bytes=vmem_limit),
    )(rel_flat, q, kg, vg, features_t, wd1, bd1, w3, b3, w2t, b2c)


# ----------------------------------------------------------------------------
# JAX glue: gather (index_points), full forward
# ----------------------------------------------------------------------------
def index_points(points, idx):
    """points [B, N, C], idx [B, S, K] -> [B, S, K, C]"""
    B, S, K = idx.shape
    C = points.shape[-1]
    flat = idx.reshape(B, S * K)
    gather_idx = jnp.broadcast_to(flat[:, :, None], (B, S * K, C))
    return jnp.take_along_axis(points, gather_idx, axis=1).reshape(B, S, K, C)


def transformer_block_forward(params, features, xyz, k):
    dm = params["w_qs"].shape[0]
    vmem = _vmem_limit_bytes()

    # A) fused pairwise distances + kNN selection (no [B,N,N] HBM round trip).
    knn_idx = knn_pallas(xyz, k, vmem)                     # [B, N, k] int32
    knn_xyz = index_points(xyz, knn_idx)                   # [B, N, k, 3]
    rel = xyz[:, :, None, :] - knn_xyz                     # [B, N, k, 3]

    # B) fused fc1 + [Wq|Wk|Wv] projection. fc1 is purely linear, so folding
    #    fc1_w @ [Wq|Wk|Wv] (and the bias) is exact.
    w_qkv = jnp.concatenate(
        [params["w_qs"], params["w_ks"], params["w_vs"]], axis=1)   # [dm, 3dm]
    w_fused = jnp.einsum("ij,jk->ik", params["fc1_w"], w_qkv,
                         precision="highest")                       # [dp, 3dm]
    b_fused = jnp.einsum("ij,jk->ik", params["fc1_b"], w_qkv,
                         precision="highest")                       # [1, 3dm]
    q, kx, vx = projections_pallas(features, w_fused.astype(jnp.bfloat16),
                                   b_fused, dm, vmem)

    # TODO(synk): kg/vg gather stays in XLA; in-kernel DMA gather via
    #             scalar-prefetched knn_idx would remove this HBM round trip.
    kg = index_points(kx, knn_idx)                         # [B, N, k, dm] bf16
    vg = index_points(vx, knn_idx)                         # [B, N, k, dm] bf16

    # C) attention hot path (Pallas), output already [B, d_points, N].
    return attention_pallas(rel, q, kg, vg, features, params, vmem)


# ----------------------------------------------------------------------------
# Deterministic parameter init (nn.Module shapes; weights stored [in, out])
# ----------------------------------------------------------------------------
def init_params(key, d_points, d_model):
    ks = jax.random.split(key, 15)

    def w(k, shape, scale=0.1):
        return (scale * jax.random.normal(k, shape)).astype(jnp.float32)

    return {
        "fc1_w": w(ks[0], (d_points, d_model)),
        "fc1_b": w(ks[1], (1, d_model)),
        "fc2_w": w(ks[2], (d_model, d_points)),
        "fc2_b": w(ks[3], (1, d_points)),
        "delta_w1": w(ks[4], (3, d_model)),
        "delta_b1": w(ks[5], (1, d_model)),
        "delta_w2": w(ks[6], (d_model, d_model)),
        "delta_b2": w(ks[7], (1, d_model)),
        "gamma_w1": w(ks[8], (d_model, d_model)),
        "gamma_b1": w(ks[9], (1, d_model)),
        "gamma_w2": w(ks[10], (d_model, d_model)),
        "gamma_b2": w(ks[11], (1, d_model)),
        "w_qs": w(ks[12], (d_model, d_model)),
        "w_ks": w(ks[13], (d_model, d_model)),
        "w_vs": w(ks[14], (d_model, d_model)),
    }


# ----------------------------------------------------------------------------
# Pure-JAX f32 reference (faithful to the PyTorch module) for the sanity check
# ----------------------------------------------------------------------------
def reference_forward(params, features, xyz, k):
    dot = lambda a, b: jnp.einsum("...i,ij->...j", a, b, precision="highest")
    dists = jnp.sum((xyz[:, :, None, :] - xyz[:, None, :, :]) ** 2, axis=-1)
    knn_idx = jnp.argsort(dists, axis=-1)[:, :, :k]
    knn_xyz = index_points(xyz, knn_idx)
    x = dot(features, params["fc1_w"]) + params["fc1_b"][0]
    q = dot(x, params["w_qs"])
    kx = dot(x, params["w_ks"])
    vx = dot(x, params["w_vs"])
    kg = index_points(kx, knn_idx)
    vg = index_points(vx, knn_idx)
    rel = xyz[:, :, None, :] - knn_xyz
    pos = dot(jax.nn.relu(dot(rel, params["delta_w1"]) + params["delta_b1"][0]),
              params["delta_w2"]) + params["delta_b2"][0]
    gin = q[:, :, None, :] - kg + pos
    g = dot(jax.nn.relu(dot(gin, params["gamma_w1"]) + params["gamma_b1"][0]),
            params["gamma_w2"]) + params["gamma_b2"][0]
    attn = jax.nn.softmax(g / math.sqrt(q.shape[-1]), axis=-2)
    res = jnp.einsum("bmnf,bmnf->bmf", attn, vg + pos)
    res = dot(res, params["fc2_w"]) + params["fc2_b"][0] + features
    return jnp.transpose(res, (0, 2, 1))


if __name__ == "__main__":
    B, N, d_points, d_model, K = 2, 16, 8, 32, 8

    key = jax.random.PRNGKey(0)
    kf, kx, kp = jax.random.split(key, 3)
    features = jax.random.normal(kf, (B, N, d_points), dtype=jnp.float32)
    xyz = jax.random.normal(kx, (B, N, 3), dtype=jnp.float32)
    params = init_params(kp, d_points, d_model)

    out = transformer_block_forward(params, features, xyz, K)
    out = jax.block_until_ready(out)

    assert out.shape == (B, d_points, N), out.shape

    ref = jax.block_until_ready(reference_forward(params, features, xyz, K))
    # Kernel path runs MXU matmuls with bf16 operands (f32 accumulation), so
    # allow a slightly looser tolerance than pure-f32.
    assert jnp.allclose(out, ref, rtol=2e-2, atol=2e-2), float(
        jnp.max(jnp.abs(out - ref)))

    print("KERNEL_OK")
</pallas_src>

<mosaic_0001>
module attributes {stable_mosaic.version = 11 : i64} {
  func.func @kernel(%arg0: i32, %arg1: i32, %arg2: memref<1x16x3xf32, #tpu.memory_space<vmem>>, %arg3: memref<1x3x16xf32, #tpu.memory_space<vmem>>, %arg4: memref<1x16x8xi32, #tpu.memory_space<vmem>>) attributes {dimension_semantics = [#tpu.dimension_semantics<parallel>, #tpu.dimension_semantics<parallel>], iteration_bounds = array<i64: 2, 1>, scalar_prefetch = 0 : i64, scratch_operands = 0 : i64, tpu.core_type = #tpu.core_type<tc>, window_params = [{transform_indices = @transform_0, window_bounds = array<i64: 1, 16, 3>}, {transform_indices = @transform_1, window_bounds = array<i64: 1, 3, 16>}, {transform_indices = @transform_2, window_bounds = array<i64: 1, 16, 8>}]} {
    %c0 = arith.constant 0 : index
    %c0_0 = arith.constant 0 : index
    %c0_1 = arith.constant 0 : index
    %0 = vector.load %arg2[%c0, %c0_0, %c0_1] : memref<1x16x3xf32, #tpu.memory_space<vmem>>, vector<1x16x3xf32>
    %1 = vector.shape_cast %0 : vector<1x16x3xf32> to vector<16x3xf32>
    %c0_2 = arith.constant 0 : index
    %c0_3 = arith.constant 0 : index
    %c0_4 = arith.constant 0 : index
    %2 = vector.load %arg3[%c0_2, %c0_3, %c0_4] : memref<1x3x16xf32, #tpu.memory_space<vmem>>, vector<1x3x16xf32>
    %3 = vector.shape_cast %2 : vector<1x3x16xf32> to vector<3x16xf32>
    %4 = vector.extract_strided_slice %1 {offsets = [0, 0], sizes = [16, 1], strides = [1, 1]} : vector<16x3xf32> to vector<16x1xf32>
    %5 = vector.extract_strided_slice %1 {offsets = [0, 1], sizes = [16, 1], strides = [1, 1]} : vector<16x3xf32> to vector<16x1xf32>
    %6 = vector.extract_strided_slice %1 {offsets = [0, 2], sizes = [16, 1], strides = [1, 1]} : vector<16x3xf32> to vector<16x1xf32>
    %7 = vector.extract_strided_slice %3 {offsets = [0, 0], sizes = [1, 16], strides = [1, 1]} : vector<3x16xf32> to vector<1x16xf32>
    %8 = vector.extract_strided_slice %3 {offsets = [1, 0], sizes = [1, 16], strides = [1, 1]} : vector<3x16xf32> to vector<1x16xf32>
    %9 = vector.extract_strided_slice %3 {offsets = [2, 0], sizes = [1, 16], strides = [1, 1]} : vector<3x16xf32> to vector<1x16xf32>
    %10 = vector.broadcast %4 : vector<16x1xf32> to vector<16x16xf32>
    %11 = vector.broadcast %7 : vector<1x16xf32> to vector<16x16xf32>
    %12 = arith.mulf %10, %11 : vector<16x16xf32>
    %13 = vector.broadcast %5 : vector<16x1xf32> to vector<16x16xf32>
    %14 = vector.broadcast %8 : vector<1x16xf32> to vector<16x16xf32>
    %15 = arith.mulf %13, %14 : vector<16x16xf32>
    %16 = arith.addf %12, %15 : vector<16x16xf32>
    %17 = vector.broadcast %6 : vector<16x1xf32> to vector<16x16xf32>
    %18 = vector.broadcast %9 : vector<1x16xf32> to vector<16x16xf32>
    %19 = arith.mulf %17, %18 : vector<16x16xf32>
    %20 = arith.addf %16, %19 : vector<16x16xf32>
    %21 = arith.mulf %4, %4 : vector<16x1xf32>
    %22 = arith.mulf %5, %5 : vector<16x1xf32>
    %23 = arith.addf %21, %22 : vector<16x1xf32>
    %24 = arith.mulf %6, %6 : vector<16x1xf32>
    %25 = arith.addf %23, %24 : vector<16x1xf32>
    %26 = arith.mulf %7, %7 : vector<1x16xf32>
    %27 = arith.mulf %8, %8 : vector<1x16xf32>
    %28 = arith.addf %26, %27 : vector<1x16xf32>
    %29 = arith.mulf %9, %9 : vector<1x16xf32>
    %30 = arith.addf %28, %29 : vector<1x16xf32>
    %31 = vector.broadcast %25 : vector<16x1xf32> to vector<16x16xf32>
    %32 = vector.broadcast %30 : vector<1x16xf32> to vector<16x16xf32>
    %33 = arith.addf %31, %32 : vector<16x16xf32>
    %cst = arith.constant 2.000000e+00 : f32
    %34 = vector.broadcast %cst : f32 to vector<16x16xf32>
    %35 = arith.mulf %34, %20 : vector<16x16xf32>
    %36 = arith.subf %33, %35 : vector<16x16xf32>
    %37 = tpu.iota {dimensions = array<i32: 1>} : vector<16x16xi32>
    %38 = arith.sitofp %37 : vector<16x16xi32> to vector<16x16xf32>
    %39 = tpu.iota {dimensions = array<i32: 1>} : vector<16x8xi32>
    %cst_5 = arith.constant 0.000000e+00 : f32
    %40 = vector.broadcast %cst_5 : f32 to vector<16x8xf32>
    %cst_6 = arith.constant dense<0x7F800000> : vector<16xf32>
    %41 = vector.multi_reduction <minimumf>, %36, %cst_6 [1] : vector<16x16xf32> to vector<16xf32>
    %42 = vector.shape_cast %41 : vector<16xf32> to vector<16x1xf32>
    %43 = vector.broadcast %42 : vector<16x1xf32> to vector<16x16xf32>
    %44 = arith.cmpf ole, %36, %43 : vector<16x16xf32>
    %cst_7 = arith.constant 1.600000e+01 : f32
    %45 = vector.broadcast %cst_7 : f32 to vector<16x16xf32>
    %46 = arith.select %44, %38, %45 : vector<16x16xi1>, vector<16x16xf32>
    %cst_8 = arith.constant dense<0x7F800000> : vector<16xf32>
    %47 = vector.multi_reduction <minimumf>, %46, %cst_8 [1] : vector<16x16xf32> to vector<16xf32>
    %48 = vector.shape_cast %47 : vector<16xf32> to vector<16x1xf32>
    %c0_i32 = arith.constant 0 : i32
    %49 = vector.broadcast %c0_i32 : i32 to vector<16x8xi32>
    %50 = arith.cmpi eq, %39, %49 : vector<16x8xi32>
    %51 = vector.shape_cast %48 : vector<16x1xf32> to vector<16x1xf32>
    %52 = vector.broadcast %51 : vector<16x1xf32> to vector<16x8xf32>
    %53 = arith.select %50, %52, %40 : vector<16x8xi1>, vector<16x8xf32>
    %54 = vector.broadcast %48 : vector<16x1xf32> to vector<16x16xf32>
    %55 = arith.cmpf oeq, %38, %54 : vector<16x16xf32>
    %cst_9 = arith.constant 1.000000e+30 : f32
    %56 = vector.broadcast %cst_9 : f32 to vector<16x16xf32>
    %57 = arith.select %55, %56, %36 : vector<16x16xi1>, vector<16x16xf32>
    %cst_10 = arith.constant dense<0x7F800000> : vector<16xf32>
    %58 = vector.multi_reduction <minimumf>, %57, %cst_10 [1] : vector<16x16xf32> to vector<16xf32>
    %59 = vector.shape_cast %58 : vector<16xf32> to vector<16x1xf32>
    %60 = vector.broadcast %59 : vector<16x1xf32> to vector<16x16xf32>
    %61 = arith.cmpf ole, %57, %60 : vector<16x16xf32>
    %cst_11 = arith.constant 1.600000e+01 : f32
    %62 = vector.broadcast %cst_11 : f32 to vector<16x16xf32>
    %63 = arith.select %61, %38, %62 : vector<16x16xi1>, vector<16x16xf32>
    %cst_12 = arith.constant dense<0x7F800000> : vector<16xf32>
    %64 = vector.multi_reduction <minimumf>, %63, %cst_12 [1] : vector<16x16xf32> to vector<16xf32>
    %65 = vector.shape_cast %64 : vector<16xf32> to vector<16x1xf32>
    %c1_i32 = arith.constant 1 : i32
    %66 = vector.broadcast %c1_i32 : i32 to vector<16x8xi32>
    %67 = arith.cmpi eq, %39, %66 : vector<16x8xi32>
    %68 = vector.shape_cast %65 : vector<16x1xf32> to vector<16x1xf32>
    %69 = vector.broadcast %68 : vector<16x1xf32> to vector<16x8xf32>
    %70 = arith.select %67, %69, %53 : vector<16x8xi1>, vector<16x8xf32>
    %71 = vector.broadcast %65 : vector<16x1xf32> to vector<16x16xf32>
    %72 = arith.cmpf oeq, %38, %71 : vector<16x16xf32>
    %cst_13 = arith.constant 1.000000e+30 : f32
    %73 = vector.broadcast %cst_13 : f32 to vector<16x16xf32>
    %74 = arith.select %72, %73, %57 : vector<16x16xi1>, vector<16x16xf32>
    %cst_14 = arith.constant dense<0x7F800000> : vector<16xf32>
    %75 = vector.multi_reduction <minimumf>, %74, %cst_14 [1] : vector<16x16xf32> to vector<16xf32>
    %76 = vector.shape_cast %75 : vector<16xf32> to vector<16x1xf32>
    %77 = vector.broadcast %76 : vector<16x1xf32> to vector<16x16xf32>
    %78 = arith.cmpf ole, %74, %77 : vector<16x16xf32>
    %cst_15 = arith.constant 1.600000e+01 : f32
    %79 = vector.broadcast %cst_15 : f32 to vector<16x16xf32>
    %80 = arith.select %78, %38, %79 : vector<16x16xi1>, vector<16x16xf32>
    %cst_16 = arith.constant dense<0x7F800000> : vector<16xf32>
    %81 = vector.multi_reduction <minimumf>, %80, %cst_16 [1] : vector<16x16xf32> to vector<16xf32>
    %82 = vector.shape_cast %81 : vector<16xf32> to vector<16x1xf32>
    %c2_i32 = arith.constant 2 : i32
    %83 = vector.broadcast %c2_i32 : i32 to vector<16x8xi32>
    %84 = arith.cmpi eq, %39, %83 : vector<16x8xi32>
    %85 = vector.shape_cast %82 : vector<16x1xf32> to vector<16x1xf32>
    %86 = vector.broadcast %85 : vector<16x1xf32> to vector<16x8xf32>
    %87 = arith.select %84, %86, %70 : vector<16x8xi1>, vector<16x8xf32>
    %88 = vector.broadcast %82 : vector<16x1xf32> to vector<16x16xf32>
    %89 = arith.cmpf oeq, %38, %88 : vector<16x16xf32>
    %cst_17 = arith.constant 1.000000e+30 : f32
    %90 = vector.broadcast %cst_17 : f32 to vector<16x16xf32>
    %91 = arith.select %89, %90, %74 : vector<16x16xi1>, vector<16x16xf32>
    %cst_18 = arith.constant dense<0x7F800000> : vector<16xf32>
    %92 = vector.multi_reduction <minimumf>, %91, %cst_18 [1] : vector<16x16xf32> to vector<16xf32>
    %93 = vector.shape_cast %92 : vector<16xf32> to vector<16x1xf32>
    %94 = vector.broadcast %93 : vector<16x1xf32> to vector<16x16xf32>
    %95 = arith.cmpf ole, %91, %94 : vector<16x16xf32>
    %cst_19 = arith.constant 1.600000e+01 : f32
    %96 = vector.broadcast %cst_19 : f32 to vector<16x16xf32>
    %97 = arith.select %95, %38, %96 : vector<16x16xi1>, vector<16x16xf32>
    %cst_20 = arith.constant dense<0x7F800000> : vector<16xf32>
    %98 = vector.multi_reduction <minimumf>, %97, %cst_20 [1] : vector<16x16xf32> to vector<16xf32>
    %99 = vector.shape_cast %98 : vector<16xf32> to vector<16x1xf32>
    %c3_i32 = arith.constant 3 : i32
    %100 = vector.broadcast %c3_i32 : i32 to vector<16x8xi32>
    %101 = arith.cmpi eq, %39, %100 : vector<16x8xi32>
    %102 = vector.shape_cast %99 : vector<16x1xf32> to vector<16x1xf32>
    %103 = vector.broadcast %102 : vector<16x1xf32> to vector<16x8xf32>
    %104 = arith.select %101, %103, %87 : vector<16x8xi1>, vector<16x8xf32>
    %105 = vector.broadcast %99 : vector<16x1xf32> to vector<16x16xf32>
    %106 = arith.cmpf oeq, %38, %105 : vector<16x16xf32>
    %cst_21 = arith.constant 1.000000e+30 : f32
    %107 = vector.broadcast %cst_21 : f32 to vector<16x16xf32>
    %108 = arith.select %106, %107, %91 : vector<16x16xi1>, vector<16x16xf32>
    %cst_22 = arith.constant dense<0x7F800000> : vector<16xf32>
    %109 = vector.multi_reduction <minimumf>, %108, %cst_22 [1] : vector<16x16xf32> to vector<16xf32>
    %110 = vector.shape_cast %109 : vector<16xf32> to vector<16x1xf32>
    %111 = vector.broadcast %110 : vector<16x1xf32> to vector<16x16xf32>
    %112 = arith.cmpf ole, %108, %111 : vector<16x16xf32>
    %cst_23 = arith.constant 1.600000e+01 : f32
    %113 = vector.broadcast %cst_23 : f32 to vector<16x16xf32>
    %114 = arith.select %112, %38, %113 : vector<16x16xi1>, vector<16x16xf32>
    %cst_24 = arith.constant dense<0x7F800000> : vector<16xf32>
    %115 = vector.multi_reduction <minimumf>, %114, %cst_24 [1] : vector<16x16xf32> to vector<16xf32>
    %116 = vector.shape_cast %115 : vector<16xf32> to vector<16x1xf32>
    %c4_i32 = arith.constant 4 : i32
    %117 = vector.broadcast %c4_i32 : i32 to vector<16x8xi32>
    %118 = arith.cmpi eq, %39, %117 : vector<16x8xi32>
    %119 = vector.shape_cast %116 : vector<16x1xf32> to vector<16x1xf32>
    %120 = vector.broadcast %119 : vector<16x1xf32> to vector<16x8xf32>
    %121 = arith.select %118, %120, %104 : vector<16x8xi1>, vector<16x8xf32>
    %122 = vector.broadcast %116 : vector<16x1xf32> to vector<16x16xf32>
    %123 = arith.cmpf oeq, %38, %122 : vector<16x16xf32>
    %cst_25 = arith.constant 1.000000e+30 : f32
    %124 = vector.broadcast %cst_25 : f32 to vector<16x16xf32>
    %125 = arith.select %123, %124, %108 : vector<16x16xi1>, vector<16x16xf32>
    %cst_26 = arith.constant dense<0x7F800000> : vector<16xf32>
    %126 = vector.multi_reduction <minimumf>, %125, %cst_26 [1] : vector<16x16xf32> to vector<16xf32>
    %127 = vector.shape_cast %126 : vector<16xf32> to vector<16x1xf32>
    %128 = vector.broadcast %127 : vector<16x1xf32> to vector<16x16xf32>
    %129 = arith.cmpf ole, %125, %128 : vector<16x16xf32>
    %cst_27 = arith.constant 1.600000e+01 : f32
    %130 = vector.broadcast %cst_27 : f32 to vector<16x16xf32>
    %131 = arith.select %129, %38, %130 : vector<16x16xi1>, vector<16x16xf32>
    %cst_28 = arith.constant dense<0x7F800000> : vector<16xf32>
    %132 = vector.multi_reduction <minimumf>, %131, %cst_28 [1] : vector<16x16xf32> to vector<16xf32>
    %133 = vector.shape_cast %132 : vector<16xf32> to vector<16x1xf32>
    %c5_i32 = arith.constant 5 : i32
    %134 = vector.broadcast %c5_i32 : i32 to vector<16x8xi32>
    %135 = arith.cmpi eq, %39, %134 : vector<16x8xi32>
    %136 = vector.shape_cast %133 : vector<16x1xf32> to vector<16x1xf32>
    %137 = vector.broadcast %136 : vector<16x1xf32> to vector<16x8xf32>
    %138 = arith.select %135, %137, %121 : vector<16x8xi1>, vector<16x8xf32>
    %139 = vector.broadcast %133 : vector<16x1xf32> to vector<16x16xf32>
    %140 = arith.cmpf oeq, %38, %139 : vector<16x16xf32>
    %cst_29 = arith.constant 1.000000e+30 : f32
    %141 = vector.broadcast %cst_29 : f32 to vector<16x16xf32>
    %142 = arith.select %140, %141, %125 : vector<16x16xi1>, vector<16x16xf32>
    %cst_30 = arith.constant dense<0x7F800000> : vector<16xf32>
    %143 = vector.multi_reduction <minimumf>, %142, %cst_30 [1] : vector<16x16xf32> to vector<16xf32>
    %144 = vector.shape_cast %143 : vector<16xf32> to vector<16x1xf32>
    %145 = vector.broadcast %144 : vector<16x1xf32> to vector<16x16xf32>
    %146 = arith.cmpf ole, %142, %145 : vector<16x16xf32>
    %cst_31 = arith.constant 1.600000e+01 : f32
    %147 = vector.broadcast %cst_31 : f32 to vector<16x16xf32>
    %148 = arith.select %146, %38, %147 : vector<16x16xi1>, vector<16x16xf32>
    %cst_32 = arith.constant dense<0x7F800000> : vector<16xf32>
    %149 = vector.multi_reduction <minimumf>, %148, %cst_32 [1] : vector<16x16xf32> to vector<16xf32>
    %150 = vector.shape_cast %149 : vector<16xf32> to vector<16x1xf32>
    %c6_i32 = arith.constant 6 : i32
    %151 = vector.broadcast %c6_i32 : i32 to vector<16x8xi32>
    %152 = arith.cmpi eq, %39, %151 : vector<16x8xi32>
    %153 = vector.shape_cast %150 : vector<16x1xf32> to vector<16x1xf32>
    %154 = vector.broadcast %153 : vector<16x1xf32> to vector<16x8xf32>
    %155 = arith.select %152, %154, %138 : vector<16x8xi1>, vector<16x8xf32>
    %156 = vector.broadcast %150 : vector<16x1xf32> to vector<16x16xf32>
    %157 = arith.cmpf oeq, %38, %156 : vector<16x16xf32>
    %cst_33 = arith.constant 1.000000e+30 : f32
    %158 = vector.broadcast %cst_33 : f32 to vector<16x16xf32>
    %159 = arith.select %157, %158, %142 : vector<16x16xi1>, vector<16x16xf32>
    %cst_34 = arith.constant dense<0x7F800000> : vector<16xf32>
    %160 = vector.multi_reduction <minimumf>, %159, %cst_34 [1] : vector<16x16xf32> to vector<16xf32>
    %161 = vector.shape_cast %160 : vector<16xf32> to vector<16x1xf32>
    %162 = vector.broadcast %161 : vector<16x1xf32> to vector<16x16xf32>
    %163 = arith.cmpf ole, %159, %162 : vector<16x16xf32>
    %cst_35 = arith.constant 1.600000e+01 : f32
    %164 = vector.broadcast %cst_35 : f32 to vector<16x16xf32>
    %165 = arith.select %163, %38, %164 : vector<16x16xi1>, vector<16x16xf32>
    %cst_36 = arith.constant dense<0x7F800000> : vector<16xf32>
    %166 = vector.multi_reduction <minimumf>, %165, %cst_36 [1] : vector<16x16xf32> to vector<16xf32>
    %167 = vector.shape_cast %166 : vector<16xf32> to vector<16x1xf32>
    %c7_i32 = arith.constant 7 : i32
    %168 = vector.broadcast %c7_i32 : i32 to vector<16x8xi32>
    %169 = arith.cmpi eq, %39, %168 : vector<16x8xi32>
    %170 = vector.shape_cast %167 : vector<16x1xf32> to vector<16x1xf32>
    %171 = vector.broadcast %170 : vector<16x1xf32> to vector<16x8xf32>
    %172 = arith.select %169, %171, %155 : vector<16x8xi1>, vector<16x8xf32>
    %173 = arith.fptosi %172 : vector<16x8xf32> to vector<16x8xi32>
    %c0_37 = arith.constant 0 : index
    %c0_38 = arith.constant 0 : index
    %c0_39 = arith.constant 0 : index
    %174 = vector.load %arg4[%c0_37, %c0_38, %c0_39] : memref<1x16x8xi32, #tpu.memory_space<vmem>>, vector<1x16x8xi32>
    %175 = vector.shape_cast %174 : vector<1x16x8xi32> to vector<16x8xi32>
    %176 = vector.shape_cast %173 : vector<16x8xi32> to vector<1x16x8xi32>
    tpu.vector_store %arg4[%c0_37, %c0_38, %c0_39], %176 {strides = array<i32>} : memref<1x16x8xi32, #tpu.memory_space<vmem>>, vector<1x16x8xi32>,
    return
  }
  func.func @transform_0(%arg0: i32, %arg1: i32) -> (i32, i32, i32) {
    %c0_i32 = arith.constant 0 : i32
    %c0_i32_0 = arith.constant 0 : i32
    return %arg0, %arg1, %c0_i32 : i32, i32, i32
  }
  func.func @transform_1(%arg0: i32, %arg1: i32) -> (i32, i32, i32) {
    %c0_i32 = arith.constant 0 : i32
    %c0_i32_0 = arith.constant 0 : i32
    %c0_i32_1 = arith.constant 0 : i32
    return %arg0, %c0_i32, %c0_i32_0 : i32, i32, i32
  }
  func.func @transform_2(%arg0: i32, %arg1: i32) -> (i32, i32, i32) {
    %c0_i32 = arith.constant 0 : i32
    %c0_i32_0 = arith.constant 0 : i32
    return %arg0, %arg1, %c0_i32 : i32, i32, i32
  }
}

</mosaic_0001>

<bundles_post_ra>
// kernel: tpu_custom_call.1
= control target key start
LH: loop header
LB: loop body
LE: loop exit
PB: predicated region body
PF: predicated region fallthrough
CT: control target
= control target key end

     0   :  { %s685_s9 = smov 0   ;;  %s687_s10 = smov 0   ;;  %s852_s0 = inlined_call_operand.vmem [shape: f32[2,16,3], index: 0, kind: input, shape index: {}]   ;;  %s853_s1 = inlined_call_operand.vmem [shape: f32[2,3,16], index: 1, kind: input, shape index: {}]   ;;  %s854_s2 = inlined_call_operand.vmem [shape: s32[2,16,8], index: 2, kind: output, shape index: {}]  }
   0x1   :  { %s689_s11 = smov 0  }
   0x2 LB: > { %s24_s12 = sadd.s32 1, %s659_s10  ;;  %p591_p0 = scmp.ge.s32.totalorder %s663_s11, 1  ;;  %s663_s11 = sphi %s689_s11, %s12_s11   ;;  %s659_s10 = sphi %s687_s10, %s856_s10   ;;  %s655_s9 = sphi %s685_s9, %s855_s9  }
   0x3   : > { %p26_p1 = scmp.ge.s32.totalorder %s24_s12, 2  ;;  %p142_p2 = scmp.lt.s32.totalorder %s663_s11, 3 }
   0x5   : > { %s858_s12 = smov (%p26_p1, %s24_s12), 0  ;;  %p143_p3 = pnand %p591_p0, %p142_p2 }
   0x6   : > { %p177_p4 = scmp.lt.s32.totalorder (!%p143_p3), %s655_s9, 1  ;;  %v665_v0 = vmov (!%p143_p3), 0   ;;  %s666_s17 = smov (!%p143_p3), 127   ;;  %v668_v5 = vmov (!%p143_p3), 1   ;;  %v669_v6 = vmov (!%p143_p3), 2   ;;  %v213_v15 = vlaneseq (!%p143_p3) }
   0x7   : > { %146 = sbr.rel (%p143_p3) target bundleno = 2599 (0xa27), region = 28  ;;  %635 = vset.pattern.permute.xlu1 (!%p143_p3), %v665_v0  ;;  %634 = vset.pattern.permute.xlu0 (!%p143_p3), %v665_v0  ;;  %s667_s18 = smov (!%p143_p3), 126   ;;  %vm302_vm0 = vcmask (!%p143_p3), 130048  }
   0x8   : > { %v214_v18 = vshrl.u32 (!%p143_p3), %v213_v15, 7  ;;  %v717_v56 = vand.u32 (!%p143_p3), 127, %v213_v15 }
   0xa   : > { %v215_v21 = vsub.s32 (!%p143_p3), 0, %v214_v18  ;;  %v229_v22 = vsub.s32 (!%p143_p3), 1, %v214_v18  ;;  %v245_v27 = vsub.s32 (!%p143_p3), 2, %v214_v18  ;;  %v720_v57 = vcvt.s32.f32 (!%p143_p3), %v717_v56 }
   0xe   : > { %s860_s9 = smov (!%p177_p4, %s655_s9), 1 }
   0xf   : > { %s599_s13 = sshll.u32 %s860_s9, 4  ;;  %s594_s19 = sshll.u32 %s860_s9, 2 }
  0x10   : > { %s184_s16 = scalar_lea.vmem %s852_s0, %s599_s13  ;;  %s189_s22 = scalar_lea.vmem %s853_s1, %s594_s19 }
  0x11   : > { %v200_v1 = vld [vmem:[%s184_s16] sm:$0xff]  ;;  %v201_v2 = vld [vmem:[%s184_s16 + $0x8] sm:$0xff]  ;;  %s198_s25 = scalar_lea.vmem %s854_s2, %s599_s13 }
  0x12   : > { %v251_v3 = vmul.f32 %v200_v1, %v200_v1  ;;  %v252_v4 = vmul.f32 %v201_v2, %v201_v2  ;;  %v202_v17 = vld [vmem:[%s189_s22] sm:$0x7] }
  0x13   : > { %v271_v19 = vmul.f32 %v202_v17, %v202_v17  ;;  %v216_v25 = vrot.slane %v202_v17, %v215_v21  ;;  %v230_v26 = vrot.slane %v202_v17, %v229_v22  ;;  %v246_v34 = vrot.slane %v202_v17, %v245_v27 }
  0x14   : > { %255 = vrot.lane.b32.xlu0 %v251_v3, %s666_s17  ;;  %263 = vrot.lane.b32.xlu1 %v251_v3, %s667_s18 }
  0x15   : > { %v273_v24 = vrot.slane %v271_v19, 1  ;;  %v276_v30 = vrot.slane %v271_v19, 2 }
  0x17   : > { %v275_v29 = vadd.f32 %v273_v24, %v271_v19 }
  0x18   : > { %257 = vrot.lane.b32.xlu0 %v252_v4, %s666_s17  ;;  %265 = vrot.lane.b32.xlu1 %v252_v4, %s667_s18 }
  0x19   : > { %v278_v35 = vadd.f32 %v276_v30, %v275_v29 }
  0x1b   : > { %v292_v44 = vrot.slane %v278_v35, %v215_v21 }
  0x1c   : > { %210 = vperm.xlu1 %635, %v201_v2   ;;  %205 = vperm.xlu0 %634, %v200_v1  }
  0x20   : > { %636 = vset.pattern.permute.xlu1 %v668_v5  ;;  %637 = vset.pattern.permute.xlu0 %v668_v5 }
  0x21   : > { %220 = vperm.xlu1 %636, %v200_v1   ;;  %224 = vperm.xlu0 %637, %v201_v2  }
  0x25   : > { %638 = vset.pattern.permute.xlu1 %v669_v6  ;;  %639 = vset.pattern.permute.xlu0 %v665_v0 }
  0x26   : > { %236 = vperm.xlu1 %638, %v200_v1  }
  0x2a   : > { %240 = vperm.xlu1 %638, %v201_v2  }
  0x2e   : > { %640 = vset.pattern.permute.xlu1 %v665_v0 }
  0x86   : > { %v256_v7 = vpop.permute.xlu0 %255  ;;  %v264_v8 = vpop.permute.xlu1 %263 }
  0x87   : > { %v261_v9 = vadd.f32 %v256_v7, %v251_v3 }
  0x89   : > { %v269_v10 = vadd.f32 %v264_v8, %v261_v9 }
  0x8a   : > { %v258_v11 = vpop.permute.xlu0 %257  ;;  %v266_v12 = vpop.permute.xlu1 %265 }
  0x8b   : > { %v262_v13 = vadd.f32 %v258_v11, %v252_v4  ;;  %281 = vperm.xlu0 %639, %v269_v10  }
  0x8d   : > { %v270_v14 = vadd.f32 %v266_v12, %v262_v13 }
  0x8f   : > { %286 = vperm.xlu1 %640, %v270_v14  }
  0x9b   : > { %v211_v16 = vpop.permute.xlu1 %210  ;;  %v206_v23 = vpop.permute.xlu0 %205 }
  0x9c   : > { %v217_v32 = vmul.f32 %v216_v25, %v206_v23  ;;  %v218_v36 = vmul.f32 %v216_v25, %v211_v16 }
  0xa0   : > { %v221_v20 = vpop.permute.xlu1 %220  ;;  %v225_v33 = vpop.permute.xlu0 %224 }
  0xa1   : > { %v231_v31 = vmul.f32 %v230_v26, %v221_v20  ;;  %v232_v39 = vmul.f32 %v230_v26, %v225_v33 }
  0xa3   : > { %v233_v37 = vadd.f32 %v231_v31, %v217_v32  ;;  %v234_v42 = vadd.f32 %v232_v39, %v218_v36 }
  0xa5   : > { %v237_v28 = vpop.permute.xlu1 %236 }
  0xa6   : > { %v247_v38 = vmul.f32 %v246_v34, %v237_v28 }
  0xa8   : > { %v249_v41 = vadd.f32 %v247_v38, %v233_v37 }
  0xa9   : > { %v241_v40 = vpop.permute.xlu1 %240 }
  0xaa   : > { %v248_v43 = vmul.f32 %v246_v34, %v241_v40  ;;  %v295_v46 = vmul.f32 2.0, %v249_v41 }
  0xac   : > { %v250_v47 = vadd.f32 %v248_v43, %v234_v42 }
  0xae   : > { %v296_v51 = vmul.f32 2.0, %v250_v47 }
 0x10a   : > { %v282_v45 = vpop.permute.xlu0 %281 }
 0x10b   : > { %v293_v48 = vadd.f32 %v292_v44, %v282_v45 }
 0x10d   : > { %v297_v49 = vsub.f32 %v293_v48, %v295_v46 }
 0x10e   : > { %v287_v50 = vpop.permute.xlu1 %286 }
 0x10f   : > { %v294_v52 = vadd.f32 %v292_v44, %v287_v50  ;;  %v303_v53 = vsel %vm302_vm0, %v297_v49, inf }
 0x110   : > { %304 = vmin.xlane.f32.xlu1 %v303_v53 }
 0x111   : > { %v298_v54 = vsub.f32 %v294_v52, %v296_v51 }
 0x113   : > { %v306_v55 = vsel %vm302_vm0, %v298_v54, inf }
 0x114   : > { %307 = vmin.xlane.f32.xlu0 %v306_v55 }
 0x19d   : > { %v305_v58 = vpop.xlane.xlu1 %304 }
 0x19e   : > { %vm309_vm1 = vcmp.le.f32.partialorder %v297_v49, %v305_v58 }
 0x19f   : > { %v311_v59 = vsel %vm309_vm1, %v720_v57, 16.0 }
 0x1a0   : > { %v313_v60 = vsel %vm302_vm0, %v311_v59, inf }
 0x1a1   : > { %314 = vmin.xlane.f32.xlu0 %v313_v60  ;;  %v308_v61 = vpop.xlane.xlu0 %307 }
 0x1a2   : > { %vm310_vm2 = vcmp.le.f32.partialorder %v298_v54, %v308_v61 }
 0x1a3   : > { %v312_v62 = vsel %vm310_vm2, %v720_v57, 16.0 }
 0x1a4   : > { %v316_v63 = vsel %vm302_vm0, %v312_v62, inf }
 0x1a5   : > { %317 = vmin.xlane.f32.xlu1 %v316_v63 }
 0x22e   : > { %v726_v0 = vpop.xlane.xlu0 %314 }
 0x22f   : > { %vm322_vm3 = vcmp.eq.f32.partialorder %v720_v57, %v726_v0 }
 0x230   : > { %v324_v1 = vsel %vm322_vm3, 1e+30, %v297_v49 }
 0x231   : > { %v326_v2 = vsel %vm302_vm0, %v324_v1, inf }
 0x232   : > { %v731_v3 = vpop.xlane.xlu1 %317  ;;  %327 = vmin.xlane.f32.xlu0 %v326_v2 }
 0x233   : > { %vm323_vm4 = vcmp.eq.f32.partialorder %v720_v57, %v731_v3 }
 0x234   : > { %v325_v4 = vsel %vm323_vm4, 1e+30, %v298_v54 }
 0x235   : > { %v329_v5 = vsel %vm302_vm0, %v325_v4, inf }
 0x236   : > { %330 = vmin.xlane.f32.xlu1 %v329_v5 }
 0x2bf   : > { %v328_v6 = vpop.xlane.xlu0 %327 }
 0x2c0   : > { %vm332_vm5 = vcmp.le.f32.partialorder %v324_v1, %v328_v6 }
 0x2c1   : > { %v334_v7 = vsel %vm332_vm5, %v720_v57, 16.0 }
 0x2c2   : > { %v336_v8 = vsel %vm302_vm0, %v334_v7, inf }
 0x2c3   : > { %v331_v9 = vpop.xlane.xlu1 %330  ;;  %337 = vmin.xlane.f32.xlu0 %v336_v8 }
 0x2c4   : > { %vm333_vm6 = vcmp.le.f32.partialorder %v325_v4, %v331_v9 }
 0x2c5   : > { %v335_v10 = vsel %vm333_vm6, %v720_v57, 16.0 }
 0x2c6   : > { %v339_v11 = vsel %vm302_vm0, %v335_v10, inf }
 0x2c7   : > { %340 = vmin.xlane.f32.xlu1 %v339_v11 }
 0x350   : > { %v740_v12 = vpop.xlane.xlu0 %337 }
 0x351   : > { %vm345_vm7 = vcmp.eq.f32.partialorder %v720_v57, %v740_v12 }
 0x352   : > { %v347_v13 = vsel %vm345_vm7, 1e+30, %v324_v1 }
 0x353   : > { %v349_v14 = vsel %vm302_vm0, %v347_v13, inf }
 0x354   : > { %v745_v15 = vpop.xlane.xlu1 %340  ;;  %350 = vmin.xlane.f32.xlu0 %v349_v14 }
 0x355   : > { %vm346_vm8 = vcmp.eq.f32.partialorder %v720_v57, %v745_v15 }
 0x356   : > { %v348_v16 = vsel %vm346_vm8, 1e+30, %v325_v4 }
 0x357   : > { %v352_v17 = vsel %vm302_vm0, %v348_v16, inf }
 0x358   : > { %353 = vmin.xlane.f32.xlu1 %v352_v17 }
 0x3e1   : > { %v351_v18 = vpop.xlane.xlu0 %350 }
 0x3e2   : > { %vm355_vm9 = vcmp.le.f32.partialorder %v347_v13, %v351_v18 }
 0x3e3   : > { %v357_v19 = vsel %vm355_vm9, %v720_v57, 16.0 }
 0x3e4   : > { %v359_v20 = vsel %vm302_vm0, %v357_v19, inf }
 0x3e5   : > { %v354_v21 = vpop.xlane.xlu1 %353  ;;  %360 = vmin.xlane.f32.xlu0 %v359_v20 }
 0x3e6   : > { %vm356_vm10 = vcmp.le.f32.partialorder %v348_v16, %v354_v21 }
 0x3e7   : > { %v358_v22 = vsel %vm356_vm10, %v720_v57, 16.0 }
 0x3e8   : > { %v362_v23 = vsel %vm302_vm0, %v358_v22, inf }
 0x3e9   : > { %363 = vmin.xlane.f32.xlu1 %v362_v23 }
 0x472   : > { %v754_v24 = vpop.xlane.xlu0 %360 }
 0x473   : > { %vm368_vm11 = vcmp.eq.f32.partialorder %v720_v57, %v754_v24 }
 0x474   : > { %v370_v25 = vsel %vm368_vm11, 1e+30, %v347_v13 }
 0x475   : > { %v372_v26 = vsel %vm302_vm0, %v370_v25, inf }
 0x476   : > { %v759_v27 = vpop.xlane.xlu1 %363  ;;  %373 = vmin.xlane.f32.xlu0 %v372_v26 }
 0x477   : > { %vm369_vm12 = vcmp.eq.f32.partialorder %v720_v57, %v759_v27 }
 0x478   : > { %v371_v28 = vsel %vm369_vm12, 1e+30, %v348_v16 }
 0x479   : > { %v375_v29 = vsel %vm302_vm0, %v371_v28, inf }
 0x47a   : > { %376 = vmin.xlane.f32.xlu1 %v375_v29 }
 0x503   : > { %v374_v30 = vpop.xlane.xlu0 %373 }
 0x504   : > { %vm378_vm13 = vcmp.le.f32.partialorder %v370_v25, %v374_v30 }
 0x505   : > { %v380_v31 = vsel %vm378_vm13, %v720_v57, 16.0 }
 0x506   : > { %v382_v32 = vsel %vm302_vm0, %v380_v31, inf }
 0x507   : > { %v377_v33 = vpop.xlane.xlu1 %376  ;;  %383 = vmin.xlane.f32.xlu0 %v382_v32 }
 0x508   : > { %vm379_vm14 = vcmp.le.f32.partialorder %v371_v28, %v377_v33 }
 0x509   : > { %v381_v34 = vsel %vm379_vm14, %v720_v57, 16.0 }
 0x50a   : > { %v385_v35 = vsel %vm302_vm0, %v381_v34, inf }
 0x50b   : > { %386 = vmin.xlane.f32.xlu1 %v385_v35 }
 0x594   : > { %v768_v36 = vpop.xlane.xlu0 %383 }
 0x595   : > { %vm391_vm15 = vcmp.eq.f32.partialorder %v720_v57, %v768_v36 }
 0x596   : > { %v393_v37 = vsel %vm391_vm15, 1e+30, %v370_v25 }
 0x597   : > { %v395_v38 = vsel %vm302_vm0, %v393_v37, inf }
 0x598   : > { %v773_v39 = vpop.xlane.xlu1 %386  ;;  %396 = vmin.xlane.f32.xlu0 %v395_v38 }
 0x599   : > { %vm392_vm1 = vcmp.eq.f32.partialorder %v720_v57, %v773_v39 }
 0x59a   : > { %v394_v40 = vsel %vm392_vm1, 1e+30, %v371_v28  ;;  %vm319_vm1 = vcmp.eq.s32.totalorder %v717_v56, 0 }
 0x59b   : > { %v398_v41 = vsel %vm302_vm0, %v394_v40, inf  ;;  %v320_v28 = vsel %vm319_vm1, %v726_v0, 0.0  ;;  %v321_v31 = vsel %vm319_vm1, %v731_v3, 0.0 }
 0x59c   : > { %399 = vmin.xlane.f32.xlu1 %v398_v41 }
 0x625   : > { %v397_v42 = vpop.xlane.xlu0 %396 }
 0x626   : > { %vm401_vm2 = vcmp.le.f32.partialorder %v393_v37, %v397_v42 }
 0x627   : > { %v403_v43 = vsel %vm401_vm2, %v720_v57, 16.0  ;;  %vm342_vm2 = vcmp.eq.s32.totalorder %v717_v56, 1 }
 0x628   : > { %v405_v44 = vsel %vm302_vm0, %v403_v43, inf  ;;  %v343_v29 = vsel %vm342_vm2, %v740_v12, %v320_v28  ;;  %v344_v0 = vsel %vm342_vm2, %v745_v15, %v321_v31 }
 0x629   : > { %v400_v45 = vpop.xlane.xlu1 %399  ;;  %406 = vmin.xlane.f32.xlu0 %v405_v44 }
 0x62a   : > { %vm402_vm3 = vcmp.le.f32.partialorder %v394_v40, %v400_v45 }
 0x62b   : > { %v404_v46 = vsel %vm402_vm3, %v720_v57, 16.0  ;;  %vm365_vm3 = vcmp.eq.s32.totalorder %v717_v56, 2 }
 0x62c   : > { %v408_v47 = vsel %vm302_vm0, %v404_v46, inf  ;;  %v366_v30 = vsel %vm365_vm3, %v754_v24, %v343_v29  ;;  %v367_v33 = vsel %vm365_vm3, %v759_v27, %v344_v0 }
 0x62d   : > { %409 = vmin.xlane.f32.xlu1 %v408_v47 }
 0x6b6   : > { %v782_v48 = vpop.xlane.xlu0 %406 }
 0x6b7   : > { %vm414_vm4 = vcmp.eq.f32.partialorder %v720_v57, %v782_v48 }
 0x6b8   : > { %v416_v49 = vsel %vm414_vm4, 1e+30, %v393_v37  ;;  %vm388_vm4 = vcmp.eq.s32.totalorder %v717_v56, 3 }
 0x6b9   : > { %v418_v50 = vsel %vm302_vm0, %v416_v49, inf  ;;  %v390_v35 = vsel %vm388_vm4, %v773_v39, %v367_v33 }
 0x6ba   : > { %v787_v51 = vpop.xlane.xlu1 %409  ;;  %419 = vmin.xlane.f32.xlu0 %v418_v50 }
 0x6bb   : > { %vm415_vm5 = vcmp.eq.f32.partialorder %v720_v57, %v787_v51 }
 0x6bc   : > { %v417_v52 = vsel %vm415_vm5, 1e+30, %v394_v40  ;;  %vm411_vm5 = vcmp.eq.s32.totalorder %v717_v56, 4 }
 0x6bd   : > { %v421_v53 = vsel %vm302_vm0, %v417_v52, inf  ;;  %v413_v3 = vsel %vm411_vm5, %v787_v51, %v390_v35 }
 0x6be   : > { %422 = vmin.xlane.f32.xlu1 %v421_v53 }
 0x747   : > { %v420_v54 = vpop.xlane.xlu0 %419 }
 0x748   : > { %vm424_vm6 = vcmp.le.f32.partialorder %v416_v49, %v420_v54 }
 0x749   : > { %v426_v55 = vsel %vm424_vm6, %v720_v57, 16.0  ;;  %vm434_vm6 = vcmp.eq.s32.totalorder %v717_v56, 5 }
 0x74a   : > { %v428_v58 = vsel %vm302_vm0, %v426_v55, inf }
 0x74b   : > { %v423_v59 = vpop.xlane.xlu1 %422  ;;  %429 = vmin.xlane.f32.xlu0 %v428_v58 }
 0x74c   : > { %vm425_vm7 = vcmp.le.f32.partialorder %v417_v52, %v423_v59 }
 0x74d   : > { %v427_v60 = vsel %vm425_vm7, %v720_v57, 16.0  ;;  %vm480_vm7 = vcmp.eq.s32.totalorder %v717_v56, 7 }
 0x74e   : > { %v431_v61 = vsel %vm302_vm0, %v427_v60, inf }
 0x74f   : > { %432 = vmin.xlane.f32.xlu1 %v431_v61 }
 0x7d8   : > { %v430_v62 = vpop.xlane.xlu0 %429 }
 0x7d9   : > { %vm437_vm8 = vcmp.eq.f32.partialorder %v720_v57, %v430_v62 }
 0x7da   : > { %v439_v63 = vsel %vm437_vm8, 1e+30, %v416_v49  ;;  %vm485_vm8 = vcmask 64512  }
 0x7db   : > { %v441_v1 = vsel %vm302_vm0, %v439_v63, inf }
 0x7dc   : > { %v433_v2 = vpop.xlane.xlu1 %432  ;;  %442 = vmin.xlane.f32.xlu0 %v441_v1 }
 0x7dd   : > { %vm438_vm9 = vcmp.eq.f32.partialorder %v720_v57, %v433_v2  ;;  %v436_v38 = vsel %vm434_vm6, %v433_v2, %v413_v3 }
 0x7de   : > { %v440_v4 = vsel %vm438_vm9, 1e+30, %v417_v52 }
 0x7df   : > { %v444_v5 = vsel %vm302_vm0, %v440_v4, inf }
 0x7e0   : > { %445 = vmin.xlane.f32.xlu1 %v444_v5 }
 0x869   : > { %v443_v6 = vpop.xlane.xlu0 %442 }
 0x86a   : > { %vm447_vm10 = vcmp.le.f32.partialorder %v439_v63, %v443_v6 }
 0x86b   : > { %v449_v7 = vsel %vm447_vm10, %v720_v57, 16.0 }
 0x86c   : > { %v451_v8 = vsel %vm302_vm0, %v449_v7, inf }
 0x86d   : > { %v446_v9 = vpop.xlane.xlu1 %445  ;;  %452 = vmin.xlane.f32.xlu0 %v451_v8 }
 0x86e   : > { %vm448_vm11 = vcmp.le.f32.partialorder %v440_v4, %v446_v9 }
 0x86f   : > { %v450_v10 = vsel %vm448_vm11, %v720_v57, 16.0 }
 0x870   : > { %v454_v11 = vsel %vm302_vm0, %v450_v10, inf }
 0x871   : > { %455 = vmin.xlane.f32.xlu1 %v454_v11 }
 0x8fa   : > { %v453_v13 = vpop.xlane.xlu0 %452 }
 0x8fb   : > { %vm460_vm12 = vcmp.eq.f32.partialorder %v720_v57, %v453_v13 }
 0x8fc   : > { %v462_v14 = vsel %vm460_vm12, 1e+30, %v439_v63 }
 0x8fd   : > { %v464_v16 = vsel %vm302_vm0, %v462_v14, inf }
 0x8fe   : > { %v456_v17 = vpop.xlane.xlu1 %455  ;;  %465 = vmin.xlane.f32.xlu0 %v464_v16 }
 0x8ff   : > { %vm461_vm13 = vcmp.eq.f32.partialorder %v720_v57, %v456_v17 }
 0x900   : > { %v463_v18 = vsel %vm461_vm13, 1e+30, %v440_v4 }
 0x901   : > { %v467_v19 = vsel %vm302_vm0, %v463_v18, inf }
 0x902   : > { %468 = vmin.xlane.f32.xlu1 %v467_v19 }
 0x98b   : > { %v466_v20 = vpop.xlane.xlu0 %465 }
 0x98c   : > { %vm470_vm14 = vcmp.le.f32.partialorder %v462_v14, %v466_v20 }
 0x98d   : > { %v472_v21 = vsel %vm470_vm14, %v720_v57, 16.0 }
 0x98e   : > { %v474_v22 = vsel %vm302_vm0, %v472_v21, inf }
 0x98f   : > { %v469_v23 = vpop.xlane.xlu1 %468  ;;  %475 = vmin.xlane.f32.xlu0 %v474_v22 }
 0x990   : > { %vm471_vm15 = vcmp.le.f32.partialorder %v463_v18, %v469_v23 }
 0x991   : > { %v473_v25 = vsel %vm471_vm15, %v720_v57, 16.0  ;;  %v389_v57 = vsel %vm388_vm4, %v768_v36, %v366_v30 }
 0x992   : > { %v477_v26 = vsel %vm302_vm0, %v473_v25, inf  ;;  %vm457_vm0 = vcmp.eq.s32.totalorder %v717_v56, 6  ;;  %v412_v32 = vsel %vm411_vm5, %v782_v48, %v389_v57 }
 0x993   : > { %478 = vmin.xlane.f32.xlu1 %v477_v26  ;;  %v435_v12 = vsel %vm434_vm6, %v430_v62, %v412_v32  ;;  %v459_v15 = vsel %vm457_vm0, %v456_v17, %v436_v38 }
 0x994   : > { %v458_v24 = vsel %vm457_vm0, %v453_v13, %v435_v12 }
 0xa1c   : > { %v476_v34 = vpop.xlane.xlu0 %475 }
 0xa1d   : > { %v481_v36 = vsel %vm480_vm7, %v476_v34, %v458_v24 }
 0xa1e   : > { %v601_v37 = vtrunc.f32 %v481_v36 }
 0xa20   : > { %v602_v27 = vcvt.f32.s32 %v601_v37  ;;  %v479_v40 = vpop.xlane.xlu1 %478 }
 0xa21   : > { %v482_v39 = vsel %vm480_vm7, %v479_v40, %v459_v15 }
 0xa22   : > { %486 = vst.msk [vmem:[%s198_s25] sm:$0xff] %vm485_vm8, %v602_v27  ;;  %v603_v41 = vtrunc.f32 %v482_v39 }
 0xa24   : > { %v604_v42 = vcvt.f32.s32 %v603_v41 }
 0xa26   : > { %487 = vst.msk [vmem:[%s198_s25 + $0x8] sm:$0xff] %vm485_vm8, %v604_v42 }
 0xa27 PF: > { %s12_s11 = sadd.s32 1, %s663_s11   ;;  %s855_s9 = smov %s659_s10 }
 0xa28   : > { %p9_p5 = scmp.ge.s32.totalorder %s12_s11, 4   ;;  %s856_s10 = smov %s858_s12 }
 0xa2a   :  { %11 = sbr.rel (!%p9_p5) target bundleno = 2 (0x2), region = 61 }

</bundles_post_ra>
